<compile_context>
chip_gen: v6e
topology: v6e:2x2x1
jax: 0.10.0
libtpu: 0.0.40
codegen_flags: <defaults>
</compile_context>

<pallas_src>
import math

import jax
import jax.numpy as jnp
from jax.experimental import pallas as pl
from jax.experimental.pallas import tpu as pltpu

INPUT_SIZE = 784
HIDDEN_SIZE = 500
NUM_CLASSES = 10

# Lane-aligned (multiples of 128) padded output dims for the weights.
HIDDEN_PAD = 512   # 4 * 128
CLASSES_PAD = 128  # 1 * 128

MAX_TM = 512       # batch tile for large batches (multiple of 128)


def _round_up(n, m):
    return ((n + m - 1) // m) * m


def _choose_tiling(batch):
    """Pick (TM, padded_batch). Multiples of 16; >=2 tiles when batch >= 32 so
    the "parallel" grid axis can shard across both TensorCores on v7x."""
    b16 = _round_up(batch, 16)
    if b16 <= 16:
        return b16, b16
    if b16 <= 2 * MAX_TM:
        tm = _round_up((b16 + 1) // 2, 16)
        return tm, 2 * tm
    return MAX_TM, _round_up(batch, MAX_TM)


def mlp_kernel(x_ref, w1_ref, b1_ref, w2_ref, b2_ref, o_ref):
    # fc1: [TM, 784](f32 -> bf16) @ [784, 512](bf16) -> f32 acc, + bias, ReLU
    x = x_ref[...].astype(jnp.bfloat16)
    h = jnp.dot(x, w1_ref[...], preferred_element_type=jnp.float32)
    h = jnp.maximum(h + b1_ref[...], 0.0)
    # fc2: [TM, 512](bf16) @ [512, 128](bf16) -> f32 acc, + bias
    out = jnp.dot(h.astype(jnp.bfloat16), w2_ref[...],
                  preferred_element_type=jnp.float32)
    o_ref[...] = (out + b2_ref[...]).astype(o_ref.dtype)


def prepare_params(w1, b1, w2, b2):
    """Pad + cast parameters ONCE (call outside the per-step hot path).
    w1: [784, 500] f32, b1: [1, 500] f32, w2: [500, 10] f32, b2: [1, 10] f32.
    Returns bf16 weights / f32 biases padded to lane-dense widths."""
    w1p = jnp.zeros((INPUT_SIZE, HIDDEN_PAD), jnp.bfloat16)
    w1p = w1p.at[:, :HIDDEN_SIZE].set(w1.astype(jnp.bfloat16))
    b1p = jnp.zeros((1, HIDDEN_PAD), jnp.float32)
    b1p = b1p.at[:, :HIDDEN_SIZE].set(b1)

    w2p = jnp.zeros((HIDDEN_PAD, CLASSES_PAD), jnp.bfloat16)
    w2p = w2p.at[:HIDDEN_SIZE, :NUM_CLASSES].set(w2.astype(jnp.bfloat16))
    b2p = jnp.zeros((1, CLASSES_PAD), jnp.float32)
    b2p = b2p.at[:, :NUM_CLASSES].set(b2)
    return w1p, b1p, w2p, b2p


def neural_net_forward_padded(x, w1p, b1p, w2p, b2p):
    """x: [B, 784] f32; padded params from prepare_params().
    Returns padded logits [Bp, 128] f32 (useful values in [:B, :NUM_CLASSES])."""
    B = x.shape[0]
    TM, Bp = _choose_tiling(B)

    if Bp != B:
        x = jnp.pad(x, ((0, Bp - B), (0, 0)))

    grid = (Bp // TM,)

    cost = pl.CostEstimate(
        flops=2 * Bp * (INPUT_SIZE * HIDDEN_PAD + HIDDEN_PAD * CLASSES_PAD),
        transcendentals=0,
        bytes_accessed=(Bp * INPUT_SIZE * 4 + w1p.size * 2 + w2p.size * 2
                        + b1p.size * 4 + b2p.size * 4 + Bp * CLASSES_PAD * 4),
    )

    return pl.pallas_call(
        mlp_kernel,
        out_shape=jax.ShapeDtypeStruct((Bp, CLASSES_PAD), jnp.float32),
        grid_spec=pltpu.PrefetchScalarGridSpec(
            num_scalar_prefetch=0,
            grid=grid,
            in_specs=[
                # x: one batch tile per grid step; last dim == full array dim.
                pl.BlockSpec((TM, INPUT_SIZE), lambda i: (i, 0)),
                # weights/biases: constant index_map -> DMA'd once, resident.
                pl.BlockSpec((INPUT_SIZE, HIDDEN_PAD), lambda i: (0, 0)),
                pl.BlockSpec((1, HIDDEN_PAD), lambda i: (0, 0)),
                pl.BlockSpec((HIDDEN_PAD, CLASSES_PAD), lambda i: (0, 0)),
                pl.BlockSpec((1, CLASSES_PAD), lambda i: (0, 0)),
            ],
            out_specs=pl.BlockSpec((TM, CLASSES_PAD), lambda i: (i, 0)),
        ),
        compiler_params=pltpu.CompilerParams(
            dimension_semantics=("parallel",),
        ),
        cost_estimate=cost,
    )(x, w1p, b1p, w2p, b2p)


def neural_net_forward(x, w1p, b1p, w2p, b2p):
    """Original contract: logits [B, NUM_CLASSES] f32 (fc1 -> ReLU -> fc2)."""
    B = x.shape[0]
    logits_pad = neural_net_forward_padded(x, w1p, b1p, w2p, b2p)
    return logits_pad[:B, :NUM_CLASSES]


def init_params(key):
    """Deterministic init matching nn.Linear's U(-1/sqrt(fan_in), 1/sqrt(fan_in)).
    Weights stored as [in_features, out_features] (transpose of PyTorch)."""
    k1, k2, k3, k4 = jax.random.split(key, 4)
    bound1 = 1.0 / math.sqrt(INPUT_SIZE)
    bound2 = 1.0 / math.sqrt(HIDDEN_SIZE)
    w1 = jax.random.uniform(k1, (INPUT_SIZE, HIDDEN_SIZE), jnp.float32,
                            minval=-bound1, maxval=bound1)
    b1 = jax.random.uniform(k2, (1, HIDDEN_SIZE), jnp.float32,
                            minval=-bound1, maxval=bound1)
    w2 = jax.random.uniform(k3, (HIDDEN_SIZE, NUM_CLASSES), jnp.float32,
                            minval=-bound2, maxval=bound2)
    b2 = jax.random.uniform(k4, (1, NUM_CLASSES), jnp.float32,
                            minval=-bound2, maxval=bound2)
    return w1, b1, w2, b2


if __name__ == "__main__":
    key = jax.random.PRNGKey(0)
    k_x, k_p = jax.random.split(key)

    batch = 8
    x = jax.random.normal(k_x, (batch, INPUT_SIZE), jnp.float32)
    w1, b1, w2, b2 = init_params(k_p)

    # One-time parameter padding/casting (outside the per-call hot path).
    padded_params = jax.block_until_ready(prepare_params(w1, b1, w2, b2))

    fwd = jax.jit(neural_net_forward)
    logits = fwd(x, *padded_params)
    jax.block_until_ready(logits)
    assert logits.shape == (batch, NUM_CLASSES)

    # Reference check in plain JAX, mirroring the bf16 operand rounding the
    # kernel applies (accumulation stays f32 in both).
    xq = x.astype(jnp.bfloat16).astype(jnp.float32)
    w1q = w1.astype(jnp.bfloat16).astype(jnp.float32)
    w2q = w2.astype(jnp.bfloat16).astype(jnp.float32)
    h = jnp.maximum(xq @ w1q + b1, 0.0)
    ref = h.astype(jnp.bfloat16).astype(jnp.float32) @ w2q + b2
    assert jnp.allclose(logits, ref, atol=1e-2, rtol=1e-2), (
        jnp.max(jnp.abs(logits - ref)))

    print("KERNEL_OK")
</pallas_src>

<mosaic_0001>
module attributes {stable_mosaic.version = 11 : i64} {
  func.func @mlp_kernel(%arg0: i32, %arg1: memref<16x784xf32, #tpu.memory_space<vmem>>, %arg2: memref<784x512xbf16, #tpu.memory_space<vmem>>, %arg3: memref<1x512xf32, #tpu.memory_space<vmem>>, %arg4: memref<512x128xbf16, #tpu.memory_space<vmem>>, %arg5: memref<1x128xf32, #tpu.memory_space<vmem>>, %arg6: memref<16x128xf32, #tpu.memory_space<vmem>>) attributes {dimension_semantics = [#tpu.dimension_semantics<parallel>], iteration_bounds = array<i64: 1>, scalar_prefetch = 0 : i64, scratch_operands = 0 : i64, tpu.core_type = #tpu.core_type<tc>, window_params = [{transform_indices = @transform_0, window_bounds = array<i64: 16, 784>}, {pipeline_mode = #tpu.pipeline_mode<synchronous>, transform_indices = @transform_1, window_bounds = array<i64: 784, 512>}, {pipeline_mode = #tpu.pipeline_mode<synchronous>, transform_indices = @transform_2, window_bounds = array<i64: 1, 512>}, {pipeline_mode = #tpu.pipeline_mode<synchronous>, transform_indices = @transform_3, window_bounds = array<i64: 512, 128>}, {pipeline_mode = #tpu.pipeline_mode<synchronous>, transform_indices = @transform_4, window_bounds = array<i64: 1, 128>}, {transform_indices = @transform_5, window_bounds = array<i64: 16, 128>}]} {
    %c0 = arith.constant 0 : index
    %c0_0 = arith.constant 0 : index
    %0 = vector.load %arg1[%c0, %c0_0] : memref<16x784xf32, #tpu.memory_space<vmem>>, vector<16x784xf32>
    %1 = arith.truncf %0 : vector<16x784xf32> to vector<16x784xbf16>
    %c0_1 = arith.constant 0 : index
    %c0_2 = arith.constant 0 : index
    %2 = vector.load %arg2[%c0_1, %c0_2] : memref<784x512xbf16, #tpu.memory_space<vmem>>, vector<784x512xbf16>
    %cst = arith.constant dense<0.000000e+00> : vector<16x512xf32>
    %3 = tpu.matmul %1, %2, %cst {dimension_numbers = #tpu.dot_dimension_numbers<[1], [0], [0], [1], [0, 0, 1, 1], [], []>} : vector<16x784xbf16>, vector<784x512xbf16>, vector<16x512xf32> -> vector<16x512xf32>
    %c0_3 = arith.constant 0 : index
    %c0_4 = arith.constant 0 : index
    %4 = vector.load %arg3[%c0_3, %c0_4] : memref<1x512xf32, #tpu.memory_space<vmem>>, vector<1x512xf32>
    %5 = vector.broadcast %4 : vector<1x512xf32> to vector<16x512xf32>
    %6 = arith.addf %3, %5 : vector<16x512xf32>
    %cst_5 = arith.constant 0.000000e+00 : f32
    %7 = vector.broadcast %cst_5 : f32 to vector<16x512xf32>
    %8 = arith.maximumf %6, %7 : vector<16x512xf32>
    %9 = arith.truncf %8 : vector<16x512xf32> to vector<16x512xbf16>
    %c0_6 = arith.constant 0 : index
    %c0_7 = arith.constant 0 : index
    %10 = vector.load %arg4[%c0_6, %c0_7] : memref<512x128xbf16, #tpu.memory_space<vmem>>, vector<512x128xbf16>
    %cst_8 = arith.constant dense<0.000000e+00> : vector<16x128xf32>
    %11 = tpu.matmul %9, %10, %cst_8 {dimension_numbers = #tpu.dot_dimension_numbers<[1], [0], [0], [1], [0, 0, 1, 1], [], []>} : vector<16x512xbf16>, vector<512x128xbf16>, vector<16x128xf32> -> vector<16x128xf32>
    %c0_9 = arith.constant 0 : index
    %c0_10 = arith.constant 0 : index
    %12 = vector.load %arg5[%c0_9, %c0_10] : memref<1x128xf32, #tpu.memory_space<vmem>>, vector<1x128xf32>
    %13 = vector.broadcast %12 : vector<1x128xf32> to vector<16x128xf32>
    %14 = arith.addf %11, %13 : vector<16x128xf32>
    %c0_11 = arith.constant 0 : index
    %c0_12 = arith.constant 0 : index
    %15 = vector.load %arg6[%c0_11, %c0_12] : memref<16x128xf32, #tpu.memory_space<vmem>>, vector<16x128xf32>
    tpu.vector_store %arg6[%c0_11, %c0_12], %14 {strides = array<i32>} : memref<16x128xf32, #tpu.memory_space<vmem>>, vector<16x128xf32>,
    return
  }
  func.func @transform_0(%arg0: i32) -> (i32, i32) {
    %c0_i32 = arith.constant 0 : i32
    %c0_i32_0 = arith.constant 0 : i32
    return %arg0, %c0_i32 : i32, i32
  }
  func.func @transform_1(%arg0: i32) -> (i32, i32) {
    %c0_i32 = arith.constant 0 : i32
    %c0_i32_0 = arith.constant 0 : i32
    %c0_i32_1 = arith.constant 0 : i32
    return %c0_i32, %c0_i32_0 : i32, i32
  }
  func.func @transform_2(%arg0: i32) -> (i32, i32) {
    %c0_i32 = arith.constant 0 : i32
    %c0_i32_0 = arith.constant 0 : i32
    %c0_i32_1 = arith.constant 0 : i32
    return %c0_i32, %c0_i32_0 : i32, i32
  }
  func.func @transform_3(%arg0: i32) -> (i32, i32) {
    %c0_i32 = arith.constant 0 : i32
    %c0_i32_0 = arith.constant 0 : i32
    %c0_i32_1 = arith.constant 0 : i32
    return %c0_i32, %c0_i32_0 : i32, i32
  }
  func.func @transform_4(%arg0: i32) -> (i32, i32) {
    %c0_i32 = arith.constant 0 : i32
    %c0_i32_0 = arith.constant 0 : i32
    %c0_i32_1 = arith.constant 0 : i32
    return %c0_i32, %c0_i32_0 : i32, i32
  }
  func.func @transform_5(%arg0: i32) -> (i32, i32) {
    %c0_i32 = arith.constant 0 : i32
    %c0_i32_0 = arith.constant 0 : i32
    return %arg0, %c0_i32 : i32, i32
  }
}

</mosaic_0001>

<bundles_post_ra>
// kernel: neural_net_forward.1
= control target key start
LH: loop header
LB: loop body
LE: loop exit
PB: predicated region body
PF: predicated region fallthrough
CT: control target
= control target key end

     0   :  { %10 = vsyncpa [#allocation3], 0  ;;  %s2762_s0 = inlined_call_operand.vmem [shape: f32[16,784], index: 0, kind: input, shape index: {}]   ;;  %s2763_s1 = inlined_call_operand.hbm [shape: bf16[784,512], index: 1, kind: input, shape index: {}]   ;;  %s2764_s2 = inlined_call_operand.vmem [shape: f32[1,512], index: 2, kind: input, shape index: {}]   ;;  %s2765_s3 = inlined_call_operand.hbm [shape: bf16[512,128], index: 3, kind: input, shape index: {}]   ;;  %s2766_s4 = inlined_call_operand.vmem [shape: f32[1,128], index: 4, kind: input, shape index: {}]   ;;  %s2767_s5 = inlined_call_operand.vmem [shape: f32[16,128], index: 5, kind: output, shape index: {}]  }
   0x1   :  { %11 = vsyncpa [#allocation5], 0  ;;  %s2633_s18 = smov [#allocation2]  }
   0x2   :  { %s19_s19 = sshll.u32 %s2633_s18, 4  ;;  %s20_s19 = int_to_ptr.vmem [resolvable:$true] %s19_s19 }
   0x3   :  { %s2597_s20 = scalar_lea.vmem %s20_s19, 25088  ;;  %p2602_p1 = scmp.lt.s32.totalorder %s20_s19, %s20_s19 }
   0x4   :  { %p2598_p0 = scmp.ne.s32.totalorder %s20_s19, %s2597_s20  ;;  %p2603_p2 = scmp.lt.s32.totalorder %s2597_s20, %s2597_s20 }
   0x6   :  { %p2604_p3 = por %p2603_p2, %p2602_p1 }
   0x8   :  { %p2605_p4 = pnand %p2604_p3, %p2598_p0 }
   0xa   :  { %2608 = shalt.err (!%p2605_p4)
}
   0xb   :  { %s2634_s21 = smov 256   ;;  %s2635_s22 = smov 16  }
   0xc   :  { %25 = dma.hbm_to_vmem [thread:$0]  %s2763_s1, 25088, %s20_s19, [#allocation3], %s2634_s21, %s2634_s21, %s2635_s22  }
   0xd   :  { %s2636_s25 = smov [#allocation4]  }
   0xe   :  { %s33_s26 = sshll.u32 %s2636_s25, 4  ;;  %s34_s26 = int_to_ptr.vmem [resolvable:$true] %s33_s26 }
   0xf   :  { %s2617_s27 = scalar_lea.vmem %s34_s26, 4096  ;;  %p2622_p6 = scmp.lt.s32.totalorder %s34_s26, %s34_s26 }
  0x10   :  { %p2618_p5 = scmp.ne.s32.totalorder %s34_s26, %s2617_s27  ;;  %p2623_p7 = scmp.lt.s32.totalorder %s2617_s27, %s2617_s27 }
  0x12   :  { %p2624_p8 = por %p2623_p7, %p2622_p6 }
  0x14   :  { %p2625_p9 = pnand %p2624_p8, %p2618_p5 }
  0x16   :  { %2628 = shalt.err (!%p2625_p9)
}
  0x17   :  { %s2637_s28 = smov 64   ;;  %s2638_s29 = smov 4  }
  0x18   :  { %39 = dma.hbm_to_vmem [thread:$0]  %s2765_s3, 4096, %s34_s26, [#allocation5], %s2637_s28, %s2637_s28, %s2638_s29  }
  0x19   :  { %2629 = dma.done.wait [#allocation3], 25088  }
  0x1a   :  { %2630 = vsyncadd [#allocation3], 4294942208 }
  0x1b   :  { %2631 = dma.done.wait [#allocation5], 4096  }
  0x1c   :  { %2632 = vsyncadd [#allocation5], 4294963200  ;;  %v2263_v0 = vld [vmem:[#allocation2 + $0xe4] ss:$16 sps:$4 sm:$0xff]   ;;  %v2267_v2 = vld [vmem:[#allocation2 + $0xe0] ss:$16 sps:$4 sm:$0xff]  }
  0x1d   :  { %v2265_v1 = vld [vmem:[#allocation2 + $0x2e4] ss:$16 sps:$4 sm:$0xff]   ;;  %1272 = vmatprep.subr.bf16.mxu0 %v2263_v0  ;;  %v2268_v3 = vld [vmem:[#allocation2 + $0x2e0] ss:$16 sps:$4 sm:$0xff]   ;;  %v50_v46 = vld [vmem:[%s2762_s0 + $0x8] sm:$0xff]  ;;  %vm1268_vm0 = vcmask 130048  }
  0x1e   :  { %1315 = vmatprep.subr.bf16.mxu1 %v2265_v1  ;;  %v2269_v4 = vld [vmem:[#allocation2 + $0xc4] ss:$16 sps:$4 sm:$0xff]   ;;  %1273 = vmatpush1.bf16.msra.mxu0 %v2267_v2  ;;  %v2273_v6 = vld [vmem:[#allocation2 + $0xc0] ss:$16 sps:$4 sm:$0xff]   ;;  %v52_v48 = vld [vmem:[%s2762_s0 + $0x18] sm:$0xff] }
  0x1f   :  { %1316 = vmatpush1.bf16.msra.mxu1 %v2268_v3  ;;  %v2271_v5 = vld [vmem:[#allocation2 + $0x2c4] ss:$16 sps:$4 sm:$0xff]   ;;  %1274 = vmatprep.subr.bf16.mxu0 %v2269_v4  ;;  %v2274_v7 = vld [vmem:[#allocation2 + $0x2c0] ss:$16 sps:$4 sm:$0xff]  }
  0x20   :  { %1317 = vmatprep.subr.bf16.mxu1 %v2271_v5  ;;  %v2275_v8 = vld [vmem:[#allocation2 + $0xa4] ss:$16 sps:$4 sm:$0xff]   ;;  %v2279_v10 = vld [vmem:[#allocation2 + $0xa0] ss:$16 sps:$4 sm:$0xff]  }
  0x21   :  { %v2277_v9 = vld [vmem:[#allocation2 + $0x2a4] ss:$16 sps:$4 sm:$0xff]   ;;  %v2280_v11 = vld [vmem:[#allocation2 + $0x2a0] ss:$16 sps:$4 sm:$0xff]  }
  0x22   :  { %1275 = vmatpush1.bf16.msra.mxu0 %v2273_v6  ;;  %v2281_v12 = vld [vmem:[#allocation2 + $0x84] ss:$16 sps:$4 sm:$0xff]   ;;  %v2285_v14 = vld [vmem:[#allocation2 + $0x80] ss:$16 sps:$4 sm:$0xff]  }
  0x23   :  { %1318 = vmatpush1.bf16.msra.mxu1 %v2274_v7  ;;  %1276 = vmatprep.subr.bf16.mxu0 %v2275_v8  ;;  %v2283_v13 = vld [vmem:[#allocation2 + $0x284] ss:$16 sps:$4 sm:$0xff]   ;;  %v2286_v15 = vld [vmem:[#allocation2 + $0x280] ss:$16 sps:$4 sm:$0xff]   ;;  %v56_v7 = vld [vmem:[%s2762_s0 + $0x38] sm:$0xff] }
  0x24   :  { %1319 = vmatprep.subr.bf16.mxu1 %v2277_v9  ;;  %v2287_v16 = vld [vmem:[#allocation2 + $0x64] ss:$16 sps:$4 sm:$0xff]   ;;  %v2291_v18 = vld [vmem:[#allocation2 + $0x60] ss:$16 sps:$4 sm:$0xff]   ;;  %v58_v9 = vld [vmem:[%s2762_s0 + $0x48] sm:$0xff] }
  0x25   :  { %v2289_v17 = vld [vmem:[#allocation2 + $0x264] ss:$16 sps:$4 sm:$0xff]   ;;  %v2292_v19 = vld [vmem:[#allocation2 + $0x260] ss:$16 sps:$4 sm:$0xff]  }
  0x26   :  { %1277 = vmatpush1.bf16.msra.mxu0 %v2279_v10  ;;  %v2293_v20 = vld [vmem:[#allocation2 + $0x44] ss:$16 sps:$4 sm:$0xff]   ;;  %v2297_v22 = vld [vmem:[#allocation2 + $0x40] ss:$16 sps:$4 sm:$0xff]  }
  0x27   :  { %1320 = vmatpush1.bf16.msra.mxu1 %v2280_v11  ;;  %1278 = vmatprep.subr.bf16.mxu0 %v2281_v12  ;;  %v2295_v21 = vld [vmem:[#allocation2 + $0x244] ss:$16 sps:$4 sm:$0xff]   ;;  %v2298_v23 = vld [vmem:[#allocation2 + $0x240] ss:$16 sps:$4 sm:$0xff]  }
  0x28   :  { %1321 = vmatprep.subr.bf16.mxu1 %v2283_v13  ;;  %v2299_v24 = vld [vmem:[#allocation2 + $0x24] ss:$16 sps:$4 sm:$0xff]   ;;  %v2303_v26 = vld [vmem:[#allocation2 + $0x20] ss:$16 sps:$4 sm:$0xff]  }
  0x29   :  { %v2301_v25 = vld [vmem:[#allocation2 + $0x224] ss:$16 sps:$4 sm:$0xff]   ;;  %v2304_v27 = vld [vmem:[#allocation2 + $0x220] ss:$16 sps:$4 sm:$0xff]  }
  0x2a   :  { %1279 = vmatpush1.bf16.msra.mxu0 %v2285_v14  ;;  %v2305_v28 = vld [vmem:[#allocation2 + $0x4] ss:$16 sps:$4 sm:$0xff]   ;;  %v2309_v30 = vld [vmem:[#allocation2] ss:$16 sps:$4 sm:$0xff]  }
  0x2b   :  { %1322 = vmatpush1.bf16.msra.mxu1 %v2286_v15  ;;  %1280 = vmatprep.subr.bf16.mxu0 %v2287_v16  ;;  %v2307_v29 = vld [vmem:[#allocation2 + $0x204] ss:$16 sps:$4 sm:$0xff]   ;;  %v2310_v31 = vld [vmem:[#allocation2 + $0x200] ss:$16 sps:$4 sm:$0xff]  }
  0x2c   :  { %1323 = vmatprep.subr.bf16.mxu1 %v2289_v17  ;;  %v2311_v32 = vld [vmem:[#allocation2 + $0x1e4] ss:$16 sps:$4 sm:$0xff]   ;;  %v2315_v34 = vld [vmem:[#allocation2 + $0x1e0] ss:$16 sps:$4 sm:$0xff]   ;;  %v2370_v17 = vld [vmem:[#allocation2 + $0xec] ss:$16 sps:$4 sm:$0xff]  }
  0x2d   :  { %v2313_v33 = vld [vmem:[#allocation2 + $0x3e4] ss:$16 sps:$4 sm:$0xff]   ;;  %v2316_v35 = vld [vmem:[#allocation2 + $0x3e0] ss:$16 sps:$4 sm:$0xff]  }
  0x2e   :  { %1281 = vmatpush1.bf16.msra.mxu0 %v2291_v18  ;;  %v2317_v36 = vld [vmem:[#allocation2 + $0x1c4] ss:$16 sps:$4 sm:$0xff]   ;;  %v2321_v38 = vld [vmem:[#allocation2 + $0x1c0] ss:$16 sps:$4 sm:$0xff]  }
  0x2f   :  { %1324 = vmatpush1.bf16.msra.mxu1 %v2292_v19  ;;  %1282 = vmatprep.subr.bf16.mxu0 %v2293_v20  ;;  %v2319_v37 = vld [vmem:[#allocation2 + $0x3c4] ss:$16 sps:$4 sm:$0xff]   ;;  %v2322_v39 = vld [vmem:[#allocation2 + $0x3c0] ss:$16 sps:$4 sm:$0xff]   ;;  %v62_v20 = vld [vmem:[%s2762_s0 + $0x68] sm:$0xff] }
  0x30   :  { %1325 = vmatprep.subr.bf16.mxu1 %v2295_v21  ;;  %v2323_v40 = vld [vmem:[#allocation2 + $0x1a4] ss:$16 sps:$4 sm:$0xff]   ;;  %v2327_v42 = vld [vmem:[#allocation2 + $0x1a0] ss:$16 sps:$4 sm:$0xff]   ;;  %v2639_v21 = vmov 0  }
  0x31   :  { %v2325_v41 = vld [vmem:[#allocation2 + $0x3a4] ss:$16 sps:$4 sm:$0xff]   ;;  %v2328_v43 = vld [vmem:[#allocation2 + $0x3a0] ss:$16 sps:$4 sm:$0xff]  }
  0x32   :  { %1283 = vmatpush1.bf16.msra.mxu0 %v2297_v22  ;;  %v2329_v44 = vld [vmem:[#allocation2 + $0x184] ss:$16 sps:$4 sm:$0xff]   ;;  %v2333_v50 = vld [vmem:[#allocation2 + $0x180] ss:$16 sps:$4 sm:$0xff]  }
  0x33   :  { %1326 = vmatpush1.bf16.msra.mxu1 %v2298_v23  ;;  %1284 = vmatprep.subr.bf16.mxu0 %v2299_v24  ;;  %v2331_v45 = vld [vmem:[#allocation2 + $0x384] ss:$16 sps:$4 sm:$0xff]   ;;  %v2334_v51 = vld [vmem:[#allocation2 + $0x380] ss:$16 sps:$4 sm:$0xff]   ;;  %v2368_v24 = vld [vmem:[#allocation2 + $0xe8] ss:$16 sps:$4 sm:$0xff]  }
  0x34   :  { %1327 = vmatprep.subr.bf16.mxu1 %v2301_v25  ;;  %v57_v47 = vld [vmem:[%s2762_s0 + $0x40] sm:$0xff]  ;;  %v59_v49 = vld [vmem:[%s2762_s0 + $0x50] sm:$0xff] }
  0x35   :  { %v2335_v52 = vld [vmem:[#allocation2 + $0x164] ss:$16 sps:$4 sm:$0xff]   ;;  %v2688_v53 = vpack.c.bf16 %v57_v47, %v50_v46  ;;  %v2690_v54 = vpack.c.bf16 %v59_v49, %v52_v48  ;;  %v2339_v56 = vld [vmem:[#allocation2 + $0x160] ss:$16 sps:$4 sm:$0xff]   ;;  %v2398_v47 = vld [vmem:[#allocation2 + $0x48] ss:$16 sps:$4 sm:$0xff]  }
  0x36   :  { %1285 = vmatpush1.bf16.msra.mxu0 %v2303_v26  ;;  %v2337_v55 = vld [vmem:[#allocation2 + $0x364] ss:$16 sps:$4 sm:$0xff]   ;;  %v2340_v57 = vld [vmem:[#allocation2 + $0x360] ss:$16 sps:$4 sm:$0xff]   ;;  %v2376_v26 = vld [vmem:[#allocation2 + $0xcc] ss:$16 sps:$4 sm:$0xff]  }
  0x37   :  { %1328 = vmatpush1.bf16.msra.mxu1 %v2304_v27  ;;  %1286 = vmatprep.subr.bf16.mxu0 %v2305_v28  ;;  %v2341_v58 = vld [vmem:[#allocation2 + $0x144] ss:$16 sps:$4 sm:$0xff]   ;;  %v2345_v60 = vld [vmem:[#allocation2 + $0x140] ss:$16 sps:$4 sm:$0xff]   ;;  %v2374_v28 = vld [vmem:[#allocation2 + $0xc8] ss:$16 sps:$4 sm:$0xff]  }
  0x38   :  { %1329 = vmatprep.subr.bf16.mxu1 %v2307_v29  ;;  %1304 = vmatprep.mubr.bf16.mxu0 %v2688_v53  ;;  %v2343_v59 = vld [vmem:[#allocation2 + $0x344] ss:$16 sps:$4 sm:$0xff]   ;;  %v2346_v61 = vld [vmem:[#allocation2 + $0x340] ss:$16 sps:$4 sm:$0xff]   ;;  %v2406_v49 = vld [vmem:[#allocation2 + $0x2c] ss:$16 sps:$4 sm:$0xff]  }
  0x39   :  { %1347 = vmatprep.mubr.bf16.mxu1 %v2690_v54  ;;  %v2347_v62 = vld [vmem:[#allocation2 + $0x124] ss:$16 sps:$4 sm:$0xff]   ;;  %v2351_v0 = vld [vmem:[#allocation2 + $0x120] ss:$16 sps:$4 sm:$0xff]  }
  0x3a   :  { %1287 = vmatpush1.bf16.msra.mxu0 %v2309_v30  ;;  %v2349_v63 = vld [vmem:[#allocation2 + $0x324] ss:$16 sps:$4 sm:$0xff]   ;;  %v2352_v1 = vld [vmem:[#allocation2 + $0x320] ss:$16 sps:$4 sm:$0xff]   ;;  %v2382_v30 = vld [vmem:[#allocation2 + $0xac] ss:$16 sps:$4 sm:$0xff]  }
  0x3b   :  { %1330 = vmatpush1.bf16.msra.mxu1 %v2310_v31  ;;  %1288 = vmatprep.subr.bf16.mxu0 %v2311_v32  ;;  %v2353_v2 = vld [vmem:[#allocation2 + $0x104] ss:$16 sps:$4 sm:$0xff]   ;;  %v2357_v4 = vld [vmem:[#allocation2 + $0x100] ss:$16 sps:$4 sm:$0xff]   ;;  %v2380_v32 = vld [vmem:[#allocation2 + $0xa8] ss:$16 sps:$4 sm:$0xff]  }
  0x3c   :  { %1331 = vmatprep.subr.bf16.mxu1 %v2313_v33  ;;  %v2355_v3 = vld [vmem:[#allocation2 + $0x304] ss:$16 sps:$4 sm:$0xff]   ;;  %v2358_v5 = vld [vmem:[#allocation2 + $0x300] ss:$16 sps:$4 sm:$0xff]  }
  0x3d   :  { %v49_v6 = vld [vmem:[%s2762_s0] sm:$0xff]  ;;  %v51_v8 = vld [vmem:[%s2762_s0 + $0x10] sm:$0xff] }
  0x3e   :  { %1289 = vmatpush2.bf16.msra.mxu0 %v2315_v34  ;;  %v2361_v10 = vld [vmem:[#allocation2 + $0x4e4] ss:$16 sps:$4 sm:$0xff]   ;;  %v2706_v12 = vpack.c.bf16 %v56_v7, %v49_v6  ;;  %v2708_v13 = vpack.c.bf16 %v58_v9, %v51_v8  ;;  %v2359_v14 = vld [vmem:[#allocation2 + $0x4e0] ss:$16 sps:$4 sm:$0xff]   ;;  %v2388_v34 = vld [vmem:[#allocation2 + $0x8c] ss:$16 sps:$4 sm:$0xff]  }
  0x3f   :  { %1332 = vmatpush2.bf16.msra.mxu1 %v2316_v35  ;;  %1290 = vmatprep.subr.bf16.mxu0 %v2317_v36  ;;  %v2364_v11 = vld [vmem:[#allocation2 + $0x604] ss:$16 sps:$4 sm:$0xff]   ;;  %v2362_v15 = vld [vmem:[#allocation2 + $0x600] ss:$16 sps:$4 sm:$0xff]   ;;  %v2386_v36 = vld [vmem:[#allocation2 + $0x88] ss:$16 sps:$4 sm:$0xff]  }
  0x40   :  { %1333 = vmatprep.subr.bf16.mxu1 %v2319_v37  ;;  %v2367_v16 = vld [vmem:[#allocation2 + $0x4c4] ss:$16 sps:$4 sm:$0xff]   ;;  %v2365_v18 = vld [vmem:[#allocation2 + $0x4c0] ss:$16 sps:$4 sm:$0xff]   ;;  %v2436_v6 = vld [vmem:[#allocation2 + $0x18c] ss:$16 sps:$4 sm:$0xff]  }
  0x41   :  { %v55_v19 = vld [vmem:[%s2762_s0 + $0x30] sm:$0xff]  ;;  %v2434_v8 = vld [vmem:[#allocation2 + $0x188] ss:$16 sps:$4 sm:$0xff]  }
  0x42   :  { %1291 = vmatpush2.bf16.msra.mxu0 %v2321_v38  ;;  %v2373_v22 = vld [vmem:[#allocation2 + $0x4a4] ss:$16 sps:$4 sm:$0xff]   ;;  %v2719_v23 = vpack.c.bf16 %v62_v20, %v55_v19  ;;  %v2371_v25 = vld [vmem:[#allocation2 + $0x4a0] ss:$16 sps:$4 sm:$0xff]   ;;  %v2394_v38 = vld [vmem:[#allocation2 + $0x6c] ss:$16 sps:$4 sm:$0xff]  }
  0x43   :  { %1334 = vmatpush2.bf16.msra.mxu1 %v2322_v39  ;;  %1292 = vmatprep.subr.bf16.mxu0 %v2323_v40  ;;  %v2379_v27 = vld [vmem:[#allocation2 + $0x484] ss:$16 sps:$4 sm:$0xff]   ;;  %v2377_v29 = vld [vmem:[#allocation2 + $0x480] ss:$16 sps:$4 sm:$0xff]   ;;  %v2392_v40 = vld [vmem:[#allocation2 + $0x68] ss:$16 sps:$4 sm:$0xff]  }
  0x44   :  { %1335 = vmatprep.subr.bf16.mxu1 %v2325_v41  ;;  %v2385_v31 = vld [vmem:[#allocation2 + $0x464] ss:$16 sps:$4 sm:$0xff]   ;;  %v2383_v33 = vld [vmem:[#allocation2 + $0x460] ss:$16 sps:$4 sm:$0xff]   ;;  %v54_v41 = vld [vmem:[%s2762_s0 + $0x28] sm:$0xff] }
  0x45   :  { %v2391_v35 = vld [vmem:[#allocation2 + $0x444] ss:$16 sps:$4 sm:$0xff]   ;;  %v2389_v37 = vld [vmem:[#allocation2 + $0x440] ss:$16 sps:$4 sm:$0xff]  }
  0x46   :  { %1293 = vmatpush2.bf16.msra.mxu0 %v2327_v42  ;;  %v2397_v39 = vld [vmem:[#allocation2 + $0x424] ss:$16 sps:$4 sm:$0xff]   ;;  %v2401_v48 = vld [vmem:[#allocation2 + $0x400] ss:$16 sps:$4 sm:$0xff]  }
  0x47   :  { %1336 = vmatpush2.bf16.msra.mxu1 %v2328_v43  ;;  %1294 = vmatprep.subr.bf16.mxu0 %v2329_v44  ;;  %v61_v42 = vld [vmem:[%s2762_s0 + $0x60] sm:$0xff] }
  0x48   :  { %1337 = vmatprep.subr.bf16.mxu1 %v2331_v45  ;;  %v2395_v43 = vld [vmem:[#allocation2 + $0x420] ss:$16 sps:$4 sm:$0xff]   ;;  %v2730_v44 = vpack.c.bf16 %v61_v42, %v54_v41  ;;  %v2400_v45 = vld [vmem:[#allocation2 + $0x4c] ss:$16 sps:$4 sm:$0xff]   ;;  %v2403_v46 = vld [vmem:[#allocation2 + $0x404] ss:$16 sps:$4 sm:$0xff]  }
  0x49   :  { %v2439_v7 = vld [vmem:[#allocation2 + $0x544] ss:$16 sps:$4 sm:$0xff]   ;;  %v2437_v9 = vld [vmem:[#allocation2 + $0x540] ss:$16 sps:$4 sm:$0xff]   ;;  %v2478_v41 = vld [vmem:[#allocation2 + $0x4ac] ss:$16 sps:$4 sm:$0xff]  }
  0x4a   :  { %1295 = vmatpush2.bf16.msra.mxu0 %v2333_v50  ;;  %v2409_v50 = vld [vmem:[#allocation2 + $0x5e4] ss:$16 sps:$4 sm:$0xff]   ;;  %v2449_v19 = vld [vmem:[#allocation2 + $0x500] ss:$16 sps:$4 sm:$0xff]   ;;  %v2481_v42 = vld [vmem:[#allocation2 + $0x26c] ss:$16 sps:$4 sm:$0xff]  }
  0x4b   :  { %1338 = vmatpush2.bf16.msra.mxu1 %v2334_v51  ;;  %1296 = vmatprep.subr.bf16.mxu0 %v2335_v52  ;;  %v2404_v51 = vld [vmem:[#allocation2 + $0x28] ss:$16 sps:$4 sm:$0xff]   ;;  %v2407_v52 = vld [vmem:[#allocation2 + $0x5e0] ss:$16 sps:$4 sm:$0xff]  }
  0x4c   :  { %1339 = vmatprep.subr.bf16.mxu1 %v2337_v55  ;;  %v2415_v55 = vld [vmem:[#allocation2 + $0x5c4] ss:$16 sps:$4 sm:$0xff]  }
  0x4d   :  { %v53_v20 = vld [vmem:[%s2762_s0 + $0x20] sm:$0xff] }
  0x4e   :  { %1297 = vmatpush2.bf16.msra.mxu0 %v2339_v56  ;;  %v2410_v56 = vld [vmem:[#allocation2 + $0x8] ss:$16 sps:$4 sm:$0xff]  }
  0x4f   :  { %1340 = vmatpush2.bf16.msra.mxu1 %v2340_v57  ;;  %1298 = vmatprep.subr.bf16.mxu0 %v2341_v58  ;;  %v2413_v57 = vld [vmem:[#allocation2 + $0x5c0] ss:$16 sps:$4 sm:$0xff]   ;;  %v2418_v58 = vld [vmem:[#allocation2 + $0x1ec] ss:$16 sps:$4 sm:$0xff]  }
  0x50   :  { %1341 = vmatprep.subr.bf16.mxu1 %v2343_v59  ;;  %v2421_v59 = vld [vmem:[#allocation2 + $0x5a4] ss:$16 sps:$4 sm:$0xff]  }
  0x52   :  { %1299 = vmatpush2.bf16.msra.mxu0 %v2345_v60  ;;  %v2416_v60 = vld [vmem:[#allocation2 + $0x1e8] ss:$16 sps:$4 sm:$0xff]  }
  0x53   :  { %1342 = vmatpush2.bf16.msra.mxu1 %v2346_v61  ;;  %1300 = vmatprep.subr.bf16.mxu0 %v2347_v62  ;;  %v2419_v61 = vld [vmem:[#allocation2 + $0x5a0] ss:$16 sps:$4 sm:$0xff]   ;;  %v2424_v62 = vld [vmem:[#allocation2 + $0x1cc] ss:$16 sps:$4 sm:$0xff]  }
  0x54   :  { %1343 = vmatprep.subr.bf16.mxu1 %v2349_v63  ;;  %v2427_v63 = vld [vmem:[#allocation2 + $0x584] ss:$16 sps:$4 sm:$0xff]  }
  0x56   :  { %1301 = vmatpush2.bf16.msra.mxu0 %v2351_v0  ;;  %v2422_v0 = vld [vmem:[#allocation2 + $0x1c8] ss:$16 sps:$4 sm:$0xff]  }
  0x57   :  { %1344 = vmatpush2.bf16.msra.mxu1 %v2352_v1  ;;  %1302 = vmatprep.subr.bf16.mxu0 %v2353_v2  ;;  %v2425_v1 = vld [vmem:[#allocation2 + $0x580] ss:$16 sps:$4 sm:$0xff]   ;;  %v2430_v2 = vld [vmem:[#allocation2 + $0x1ac] ss:$16 sps:$4 sm:$0xff]  }
  0x58   :  { %1345 = vmatprep.subr.bf16.mxu1 %v2355_v3  ;;  %v2433_v3 = vld [vmem:[#allocation2 + $0x564] ss:$16 sps:$4 sm:$0xff]  }
  0x5a   :  { %1303 = vmatpush2.bf16.msra.mxu0 %v2357_v4  ;;  %v2428_v4 = vld [vmem:[#allocation2 + $0x1a8] ss:$16 sps:$4 sm:$0xff]  }
  0x5b   :  { %1346 = vmatpush2.bf16.msra.mxu1 %v2358_v5  ;;  %1358 = vmatprep.subr.bf16.mxu0 %v2361_v10  ;;  %v2431_v5 = vld [vmem:[#allocation2 + $0x560] ss:$16 sps:$4 sm:$0xff]   ;;  %v2442_v10 = vld [vmem:[#allocation2 + $0x16c] ss:$16 sps:$4 sm:$0xff]  }
  0x5c   :  { %1415 = vmatprep.subr.bf16.mxu1 %v2364_v11  ;;  %v2445_v11 = vld [vmem:[#allocation2 + $0x524] ss:$16 sps:$4 sm:$0xff]  }
  0x5d   :  { %1305 = vmatmul.mubr.bf16.vlgmr.msra.gmra.mxu0 %v2706_v12 }
  0x5e   :  { %1348 = vmatmul.mubr.bf16.vlgmr.msra.gmra.mxu1 %v2708_v13  ;;  %1359 = vmatpush1.bf16.msra.mxu0 %v2359_v14  ;;  %v2440_v14 = vld [vmem:[#allocation2 + $0x168] ss:$16 sps:$4 sm:$0xff]  }
  0x5f   :  { %1416 = vmatpush1.bf16.msra.mxu1 %v2362_v15  ;;  %1360 = vmatprep.subr.bf16.mxu0 %v2367_v16  ;;  %v2443_v15 = vld [vmem:[#allocation2 + $0x520] ss:$16 sps:$4 sm:$0xff]   ;;  %v2448_v16 = vld [vmem:[#allocation2 + $0x14c] ss:$16 sps:$4 sm:$0xff]  }
  0x60   :  { %1433 = vmatprep.mubr.bf16.mxu1 %v2639_v21  ;;  %1444 = vmatprep.subr.bf16.mxu1 %v2370_v17  ;;  %v2451_v17 = vld [vmem:[#allocation2 + $0x504] ss:$16 sps:$4 sm:$0xff]  }
  0x61   :  { %1390 = vmatprep.mubr.bf16.mxu0 %v2730_v44 }
  0x62   :  { %1361 = vmatpush1.bf16.msra.mxu0 %v2365_v18  ;;  %v2446_v18 = vld [vmem:[#allocation2 + $0x148] ss:$16 sps:$4 sm:$0xff]  }
  0x63   :  { %1362 = vmatprep.subr.bf16.mxu0 %v2373_v22  ;;  %v60_v22 = vld [vmem:[%s2762_s0 + $0x58] sm:$0xff] }
  0x66   :  { %2177 = vmatmul.mubr.msk.bf16.vlgmr.msra.gmra.mxu1 %vm1268_vm0, %v2719_v23  ;;  %1363 = vmatpush1.bf16.msra.mxu0 %v2371_v25  ;;  %v2457_v25 = vld [vmem:[#allocation2 + $0x2ec] ss:$16 sps:$4 sm:$0xff]  }
  0x67   :  { %1445 = vmatpush1.bf16.msra.mxu1 %v2368_v24  ;;  %1364 = vmatprep.subr.bf16.mxu0 %v2379_v27  ;;  %v2454_v24 = vld [vmem:[#allocation2 + $0x12c] ss:$16 sps:$4 sm:$0xff]   ;;  %v2452_v27 = vld [vmem:[#allocation2 + $0x128] ss:$16 sps:$4 sm:$0xff]  }
  0x68   :  { %1446 = vmatprep.subr.bf16.mxu1 %v2376_v26  ;;  %1476 = vmatprep.mubr.bf16.mxu1 %v2688_v53  ;;  %v2412_v53 = vld [vmem:[#allocation2 + $0xc] ss:$16 sps:$4 sm:$0xff]   ;;  %v2739_v26 = vpack.c.bf16 %v60_v22, %v53_v20  ;;  %v2536_v20 = vld [vmem:[#allocation2 + $0x568] ss:$16 sps:$4 sm:$0xff]  }
  0x69   :  { %v2539_v22 = vld [vmem:[#allocation2 + $0x328] ss:$16 sps:$4 sm:$0xff]  }
  0x6a   :  { %1365 = vmatpush1.bf16.msra.mxu0 %v2377_v29  ;;  %v2460_v29 = vld [vmem:[#allocation2 + $0x10c] ss:$16 sps:$4 sm:$0xff]  }
  0x6b   :  { %1447 = vmatpush1.bf16.msra.mxu1 %v2374_v28  ;;  %1366 = vmatprep.subr.bf16.mxu0 %v2385_v31  ;;  %v2455_v28 = vld [vmem:[#allocation2 + $0x2e8] ss:$16 sps:$4 sm:$0xff]  }
  0x6c   :  { %1448 = vmatprep.subr.bf16.mxu1 %v2382_v30  ;;  %v2463_v30 = vld [vmem:[#allocation2 + $0x2cc] ss:$16 sps:$4 sm:$0xff]   ;;  %v2458_v31 = vld [vmem:[#allocation2 + $0x108] ss:$16 sps:$4 sm:$0xff]  }
  0x6e   :  { %1367 = vmatpush1.bf16.msra.mxu0 %v2383_v33  ;;  %v2466_v33 = vld [vmem:[#allocation2 + $0x4ec] ss:$16 sps:$4 sm:$0xff]  }
  0x6f   :  { %1449 = vmatpush1.bf16.msra.mxu1 %v2380_v32  ;;  %1368 = vmatprep.subr.bf16.mxu0 %v2391_v35  ;;  %v2461_v32 = vld [vmem:[#allocation2 + $0x2c8] ss:$16 sps:$4 sm:$0xff]  }
  0x70   :  { %1450 = vmatprep.subr.bf16.mxu1 %v2388_v34  ;;  %v2469_v34 = vld [vmem:[#allocation2 + $0x2ac] ss:$16 sps:$4 sm:$0xff]   ;;  %v2464_v35 = vld [vmem:[#allocation2 + $0x4e8] ss:$16 sps:$4 sm:$0xff]  }
  0x72   :  { %1369 = vmatpush1.bf16.msra.mxu0 %v2389_v37  ;;  %v2472_v37 = vld [vmem:[#allocation2 + $0x4cc] ss:$16 sps:$4 sm:$0xff]  }
  0x73   :  { %1451 = vmatpush1.bf16.msra.mxu1 %v2386_v36  ;;  %1370 = vmatprep.subr.bf16.mxu0 %v2397_v39  ;;  %v2467_v36 = vld [vmem:[#allocation2 + $0x2a8] ss:$16 sps:$4 sm:$0xff]  }
  0x74   :  { %1452 = vmatprep.subr.bf16.mxu1 %v2394_v38  ;;  %v2475_v38 = vld [vmem:[#allocation2 + $0x28c] ss:$16 sps:$4 sm:$0xff]   ;;  %v2470_v39 = vld [vmem:[#allocation2 + $0x4c8] ss:$16 sps:$4 sm:$0xff]  }
  0x76   :  { %1371 = vmatpush1.bf16.msra.mxu0 %v2395_v43  ;;  %v2476_v43 = vld [vmem:[#allocation2 + $0x4a8] ss:$16 sps:$4 sm:$0xff]  }
  0x77   :  { %1453 = vmatpush1.bf16.msra.mxu1 %v2392_v40  ;;  %1372 = vmatprep.subr.bf16.mxu0 %v2403_v46  ;;  %v2473_v40 = vld [vmem:[#allocation2 + $0x288] ss:$16 sps:$4 sm:$0xff]   ;;  %v2487_v46 = vld [vmem:[#allocation2 + $0x24c] ss:$16 sps:$4 sm:$0xff]  }
  0x78   :  { %1454 = vmatprep.subr.bf16.mxu1 %v2400_v45  ;;  %v2479_v45 = vld [vmem:[#allocation2 + $0x268] ss:$16 sps:$4 sm:$0xff]  }
  0x7a   :  { %1373 = vmatpush1.bf16.msra.mxu0 %v2401_v48  ;;  %v2485_v48 = vld [vmem:[#allocation2 + $0x248] ss:$16 sps:$4 sm:$0xff]  }
  0x7b   :  { %1455 = vmatpush1.bf16.msra.mxu1 %v2398_v47  ;;  %1374 = vmatprep.subr.bf16.mxu0 %v2409_v50  ;;  %v2482_v47 = vld [vmem:[#allocation2 + $0x488] ss:$16 sps:$4 sm:$0xff]  }
  0x7c   :  { %1456 = vmatprep.subr.bf16.mxu1 %v2406_v49  ;;  %v2490_v49 = vld [vmem:[#allocation2 + $0x46c] ss:$16 sps:$4 sm:$0xff]   ;;  %v2488_v50 = vld [vmem:[#allocation2 + $0x468] ss:$16 sps:$4 sm:$0xff]  }
  0x7e   :  { %1375 = vmatpush2.bf16.msra.mxu0 %v2407_v52  ;;  %v2496_v52 = vld [vmem:[#allocation2 + $0x44c] ss:$16 sps:$4 sm:$0xff]  }
  0x7f   :  { %1457 = vmatpush1.bf16.msra.mxu1 %v2404_v51  ;;  %1376 = vmatprep.subr.bf16.mxu0 %v2415_v55  ;;  %v2491_v51 = vld [vmem:[#allocation2 + $0x228] ss:$16 sps:$4 sm:$0xff]  }
  0x80   :  { %1458 = vmatprep.subr.bf16.mxu1 %v2412_v53  ;;  %v2499_v53 = vld [vmem:[#allocation2 + $0x20c] ss:$16 sps:$4 sm:$0xff]   ;;  %v2497_v55 = vld [vmem:[#allocation2 + $0x208] ss:$16 sps:$4 sm:$0xff]  }
  0x82   :  { %1377 = vmatpush2.bf16.msra.mxu0 %v2413_v57  ;;  %v2505_v57 = vld [vmem:[#allocation2 + $0x3ec] ss:$16 sps:$4 sm:$0xff]  }
  0x83   :  { %1459 = vmatpush1.bf16.msra.mxu1 %v2410_v56  ;;  %1378 = vmatprep.subr.bf16.mxu0 %v2421_v59  ;;  %v2502_v56 = vld [vmem:[#allocation2 + $0x42c] ss:$16 sps:$4 sm:$0xff]   ;;  %v2503_v59 = vld [vmem:[#allocation2 + $0x3e8] ss:$16 sps:$4 sm:$0xff]  }
  0x84   :  { %1460 = vmatprep.subr.bf16.mxu1 %v2418_v58  ;;  %v2500_v58 = vld [vmem:[#allocation2 + $0x428] ss:$16 sps:$4 sm:$0xff]  }
  0x86   :  { %1379 = vmatpush2.bf16.msra.mxu0 %v2419_v61  ;;  %v2511_v61 = vld [vmem:[#allocation2 + $0x3cc] ss:$16 sps:$4 sm:$0xff]  }
  0x87   :  { %1461 = vmatpush2.bf16.msra.mxu1 %v2416_v60  ;;  %1380 = vmatprep.subr.bf16.mxu0 %v2427_v63  ;;  %v2508_v60 = vld [vmem:[#allocation2 + $0x40c] ss:$16 sps:$4 sm:$0xff]   ;;  %v2509_v63 = vld [vmem:[#allocation2 + $0x3c8] ss:$16 sps:$4 sm:$0xff]  }
  0x88   :  { %1462 = vmatprep.subr.bf16.mxu1 %v2424_v62  ;;  %v2506_v62 = vld [vmem:[#allocation2 + $0x408] ss:$16 sps:$4 sm:$0xff]  }
  0x8a   :  { %1381 = vmatpush2.bf16.msra.mxu0 %v2425_v1  ;;  %v2517_v1 = vld [vmem:[#allocation2 + $0x3ac] ss:$16 sps:$4 sm:$0xff]  }
  0x8b   :  { %1463 = vmatpush2.bf16.msra.mxu1 %v2422_v0  ;;  %1382 = vmatprep.subr.bf16.mxu0 %v2433_v3  ;;  %v2514_v0 = vld [vmem:[#allocation2 + $0x5ec] ss:$16 sps:$4 sm:$0xff]   ;;  %v2515_v3 = vld [vmem:[#allocation2 + $0x3a8] ss:$16 sps:$4 sm:$0xff]  }
  0x8c   :  { %1464 = vmatprep.subr.bf16.mxu1 %v2430_v2  ;;  %v2512_v2 = vld [vmem:[#allocation2 + $0x5e8] ss:$16 sps:$4 sm:$0xff]  }
  0x8e   :  { %1383 = vmatpush2.bf16.msra.mxu0 %v2431_v5  ;;  %v2523_v5 = vld [vmem:[#allocation2 + $0x38c] ss:$16 sps:$4 sm:$0xff]  }
  0x8f   :  { %1465 = vmatpush2.bf16.msra.mxu1 %v2428_v4  ;;  %1384 = vmatprep.subr.bf16.mxu0 %v2439_v7  ;;  %v2520_v4 = vld [vmem:[#allocation2 + $0x5cc] ss:$16 sps:$4 sm:$0xff]   ;;  %v2521_v7 = vld [vmem:[#allocation2 + $0x388] ss:$16 sps:$4 sm:$0xff]  }
  0x90   :  { %1466 = vmatprep.subr.bf16.mxu1 %v2436_v6  ;;  %v2518_v6 = vld [vmem:[#allocation2 + $0x5c8] ss:$16 sps:$4 sm:$0xff]  }
  0x92   :  { %1385 = vmatpush2.bf16.msra.mxu0 %v2437_v9  ;;  %v2529_v9 = vld [vmem:[#allocation2 + $0x36c] ss:$16 sps:$4 sm:$0xff]  }
  0x93   :  { %1467 = vmatpush2.bf16.msra.mxu1 %v2434_v8  ;;  %1386 = vmatprep.subr.bf16.mxu0 %v2445_v11  ;;  %v2526_v8 = vld [vmem:[#allocation2 + $0x5ac] ss:$16 sps:$4 sm:$0xff]   ;;  %v2527_v11 = vld [vmem:[#allocation2 + $0x368] ss:$16 sps:$4 sm:$0xff]  }
  0x94   :  { %1468 = vmatprep.subr.bf16.mxu1 %v2442_v10  ;;  %v2524_v10 = vld [vmem:[#allocation2 + $0x5a8] ss:$16 sps:$4 sm:$0xff]  }
  0x96   :  { %1387 = vmatpush2.bf16.msra.mxu0 %v2443_v15  ;;  %v2535_v15 = vld [vmem:[#allocation2 + $0x34c] ss:$16 sps:$4 sm:$0xff]  }
  0x97   :  { %1469 = vmatpush2.bf16.msra.mxu1 %v2440_v14  ;;  %1388 = vmatprep.subr.bf16.mxu0 %v2451_v17  ;;  %v2532_v14 = vld [vmem:[#allocation2 + $0x58c] ss:$16 sps:$4 sm:$0xff]   ;;  %v2533_v17 = vld [vmem:[#allocation2 + $0x348] ss:$16 sps:$4 sm:$0xff]  }
  0x98   :  { %1470 = vmatprep.subr.bf16.mxu1 %v2448_v16  ;;  %v2530_v16 = vld [vmem:[#allocation2 + $0x588] ss:$16 sps:$4 sm:$0xff]  }
  0x9a   :  { %1389 = vmatpush2.bf16.msra.mxu0 %v2449_v19  ;;  %v2541_v19 = vld [vmem:[#allocation2 + $0x32c] ss:$16 sps:$4 sm:$0xff]  }
  0x9b   :  { %1471 = vmatpush2.bf16.msra.mxu1 %v2446_v18  ;;  %1487 = vmatprep.subr.bf16.mxu0 %v2457_v25  ;;  %v2538_v18 = vld [vmem:[#allocation2 + $0x56c] ss:$16 sps:$4 sm:$0xff]  }
  0x9c   :  { %1472 = vmatprep.subr.bf16.mxu1 %v2454_v24  ;;  %v2544_v24 = vld [vmem:[#allocation2 + $0x54c] ss:$16 sps:$4 sm:$0xff]  }
  0x9d   :  { %1391 = vmatmul.mubr.bf16.vlgmr.msra.gmra.mxu0 %v2739_v26  ;;  %v2547_v25 = vld [vmem:[#allocation2 + $0x30c] ss:$16 sps:$4 sm:$0xff]  }
  0x9e   :  { %1488 = vmatpush1.bf16.msra.mxu0 %v2455_v28  ;;  %1519 = vmatprep.mubr.bf16.mxu0 %v2690_v54  ;;  %v2484_v54 = vld [vmem:[#allocation2 + $0x48c] ss:$16 sps:$4 sm:$0xff]   ;;  %v2545_v28 = vld [vmem:[#allocation2 + $0x308] ss:$16 sps:$4 sm:$0xff]  }
  0x9f   :  { %1473 = vmatpush2.bf16.msra.mxu1 %v2452_v27  ;;  %1489 = vmatprep.subr.bf16.mxu0 %v2463_v30  ;;  %v2542_v27 = vld [vmem:[#allocation2 + $0x548] ss:$16 sps:$4 sm:$0xff]   ;;  %v2553_v30 = vld [vmem:[#allocation2 + $0x60c] ss:$16 sps:$4 sm:$0xff]  }
  0xa0   :  { %1474 = vmatprep.subr.bf16.mxu1 %v2460_v29  ;;  %v2550_v29 = vld [vmem:[#allocation2 + $0x52c] ss:$16 sps:$4 sm:$0xff]  }
  0xa2   :  { %1490 = vmatpush1.bf16.msra.mxu0 %v2461_v32  ;;  %v2551_v32 = vld [vmem:[#allocation2 + $0x608] ss:$16 sps:$4 sm:$0xff]  }
  0xa3   :  { %1475 = vmatpush2.bf16.msra.mxu1 %v2458_v31  ;;  %1491 = vmatprep.subr.bf16.mxu0 %v2469_v34  ;;  %v2548_v31 = vld [vmem:[#allocation2 + $0x528] ss:$16 sps:$4 sm:$0xff]  }
  0xa4   :  { %1530 = vmatprep.subr.bf16.mxu1 %v2466_v33  ;;  %v2556_v33 = vld [vmem:[#allocation2 + $0x50c] ss:$16 sps:$4 sm:$0xff]  }
  0xa5   :  { %v2557_v34 = vld [vmem:[#allocation4 + $0x78] sm:$0xff]  }
  0xa6   :  { %1477 = vmatmul.mubr.bf16.vlgmr.msra.gmra.mxu1 %v2706_v12  ;;  %1492 = vmatpush1.bf16.msra.mxu0 %v2467_v36  ;;  %v2493_v12 = vld [vmem:[#allocation2 + $0x22c] ss:$16 sps:$4 sm:$0xff]  }
  0xa7   :  { %1531 = vmatpush1.bf16.msra.mxu1 %v2464_v35  ;;  %1493 = vmatprep.subr.bf16.mxu0 %v2475_v38  ;;  %v2554_v35 = vld [vmem:[#allocation2 + $0x508] ss:$16 sps:$4 sm:$0xff]   ;;  %v2560_v38 = vld [vmem:[#allocation4 + $0x30] sm:$0xff]  }
  0xa8   :  { %1532 = vmatprep.subr.bf16.mxu1 %v2472_v37  ;;  %1562 = vmatprep.mubr.bf16.mxu1 %v2730_v44  ;;  %v2494_v44 = vld [vmem:[#allocation2 + $0x448] ss:$16 sps:$4 sm:$0xff]   ;;  %v2559_v37 = vld [vmem:[#allocation4 + $0x70] sm:$0xff]  }
  0xa9   :  { %v2558_v36 = vld [vmem:[#allocation4 + $0x38] sm:$0xff]  }
  0xaa   :  { %1494 = vmatpush1.bf16.msra.mxu0 %v2473_v40  ;;  %v2563_v40 = vld [vmem:[#allocation4 + $0x60] sm:$0xff]  }
  0xab   :  { %1533 = vmatpush1.bf16.msra.mxu1 %v2470_v39  ;;  %1495 = vmatprep.subr.bf16.mxu0 %v2481_v42  ;;  %v2561_v39 = vld [vmem:[#allocation4 + $0x68] sm:$0xff]   ;;  %v2574_v42 = vld [vmem:[#allocation4 + $0xb8] sm:$0xff]  }
  0xac   :  { %1534 = vmatprep.subr.bf16.mxu1 %v2478_v41  ;;  %v2573_v41 = vld [vmem:[#allocation4 + $0xf8] sm:$0xff]  }
  0xae   :  { %1496 = vmatpush1.bf16.msra.mxu0 %v2479_v45  ;;  %v2565_v45 = vld [vmem:[#allocation4 + $0x58] sm:$0xff]  }
  0xaf   :  { %1535 = vmatpush1.bf16.msra.mxu1 %v2476_v43  ;;  %1497 = vmatprep.subr.bf16.mxu0 %v2487_v46  ;;  %v2564_v43 = vld [vmem:[#allocation4 + $0x20] sm:$0xff]   ;;  %v2567_v46 = vld [vmem:[#allocation4 + $0x50] sm:$0xff]  }
  0xb0   :  { %1536 = vmatprep.subr.bf16.mxu1 %v2484_v54  ;;  %v2566_v54 = vld [vmem:[#allocation4 + $0x18] sm:$0xff]  }
  0xb2   :  { %1498 = vmatpush1.bf16.msra.mxu0 %v2485_v48  ;;  %v2569_v48 = vld [vmem:[#allocation4 + $0x48] sm:$0xff]  }
  0xb3   :  { %1537 = vmatpush1.bf16.msra.mxu1 %v2482_v47  ;;  %1499 = vmatprep.subr.bf16.mxu0 %v2493_v12  ;;  %v2568_v47 = vld [vmem:[#allocation4 + $0x10] sm:$0xff]   ;;  %v2571_v12 = vld [vmem:[#allocation4 + $0x40] sm:$0xff]  }
  0xb4   :  { %1538 = vmatprep.subr.bf16.mxu1 %v2490_v49  ;;  %v2570_v49 = vld [vmem:[#allocation4 + $0x8] sm:$0xff]  }
  0xb6   :  { %1500 = vmatpush1.bf16.msra.mxu0 %v2491_v51  ;;  %v2578_v51 = vld [vmem:[#allocation4 + $0xa8] sm:$0xff]  }
  0xb7   :  { %1539 = vmatpush1.bf16.msra.mxu1 %v2488_v50  ;;  %1501 = vmatprep.subr.bf16.mxu0 %v2499_v53  ;;  %v2572_v50 = vld [vmem:[#allocation4] sm:$0xff]  }
  0xb8   :  { %1540 = vmatprep.subr.bf16.mxu1 %v2496_v52  ;;  %v2579_v52 = vld [vmem:[#allocation4 + $0xe0] sm:$0xff]  }
  0xb9   :  { %v2580_v53 = vld [vmem:[#allocation4 + $0xa0] sm:$0xff]  }
  0xba   :  { %1502 = vmatpush1.bf16.msra.mxu0 %v2497_v55  ;;  %v2582_v55 = vld [vmem:[#allocation4 + $0x98] sm:$0xff]  }
  0xbb   :  { %1541 = vmatpush1.bf16.msra.mxu1 %v2494_v44  ;;  %1503 = vmatprep.subr.bf16.mxu0 %v2505_v57  ;;  %v2581_v44 = vld [vmem:[#allocation4 + $0xd8] sm:$0xff]   ;;  %v2584_v57 = vld [vmem:[#allocation4 + $0x90] sm:$0xff]  }
  0xbc   :  { %1542 = vmatprep.subr.bf16.mxu1 %v2502_v56  ;;  %v2583_v56 = vld [vmem:[#allocation4 + $0xd0] sm:$0xff]  }
  0xbe   :  { %1504 = vmatpush2.bf16.msra.mxu0 %v2503_v59  ;;  %v2586_v59 = vld [vmem:[#allocation4 + $0x88] sm:$0xff]  }
  0xbf   :  { %1543 = vmatpush1.bf16.msra.mxu1 %v2500_v58  ;;  %1505 = vmatprep.subr.bf16.mxu0 %v2511_v61  ;;  %v2585_v58 = vld [vmem:[#allocation4 + $0xc8] sm:$0xff]   ;;  %v2588_v61 = vld [vmem:[#allocation4 + $0x80] sm:$0xff]  }
  0xc0   :  { %1544 = vmatprep.subr.bf16.mxu1 %v2508_v60  ;;  %v2587_v60 = vld [vmem:[#allocation4 + $0xc0] sm:$0xff]  }
  0xc2   :  { %1506 = vmatpush2.bf16.msra.mxu0 %v2509_v63  ;;  %v268_v63 = vlaneseq }
  0xc3   :  { %1545 = vmatpush1.bf16.msra.mxu1 %v2506_v62  ;;  %1507 = vmatprep.subr.bf16.mxu0 %v2517_v1 }
  0xc4   :  { %1546 = vmatprep.subr.bf16.mxu1 %v2514_v0  ;;  %v269_v1 = vshrl.u32 %v268_v63, 7 }
  0xc6   :  { %1508 = vmatpush2.bf16.msra.mxu0 %v2515_v3 }
  0xc7   :  { %1547 = vmatpush2.bf16.msra.mxu1 %v2512_v2  ;;  %1509 = vmatprep.subr.bf16.mxu0 %v2523_v5  ;;  %v270_v5 = vsub.s32 0, %v269_v1 }
  0xc8   :  { %1548 = vmatprep.subr.bf16.mxu1 %v2520_v4  ;;  %v274_v4 = vsub.s32 1, %v269_v1 }
  0xca   :  { %1510 = vmatpush2.bf16.msra.mxu0 %v2521_v7  ;;  %v266_v7 = vld [vmem:[%s2764_s2] sm:$0xf] }
  0xcb   :  { %1549 = vmatpush2.bf16.msra.mxu1 %v2518_v6  ;;  %1511 = vmatprep.subr.bf16.mxu0 %v2529_v9  ;;  %v275_v9 = vrot.slane %v266_v7, %v274_v4 }
  0xcc   :  { %1550 = vmatprep.subr.bf16.mxu1 %v2526_v8 }
  0xce   :  { %1512 = vmatpush2.bf16.msra.mxu0 %v2527_v11 }
  0xcf   :  { %1551 = vmatpush2.bf16.msra.mxu1 %v2524_v10  ;;  %1513 = vmatprep.subr.bf16.mxu0 %v2535_v15  ;;  %v271_v10 = vrot.slane %v266_v7, %v270_v5 }
  0xd0   :  { %1552 = vmatprep.subr.bf16.mxu1 %v2532_v14 }
  0xd2   :  { %1514 = vmatpush2.bf16.msra.mxu0 %v2533_v17 }
  0xd3   :  { %1553 = vmatpush2.bf16.msra.mxu1 %v2530_v16  ;;  %1515 = vmatprep.subr.bf16.mxu0 %v2541_v19 }
  0xd4   :  { %1554 = vmatprep.subr.bf16.mxu1 %v2538_v18 }
  0xd6   :  { %1516 = vmatpush2.bf16.msra.mxu0 %v2539_v22 }
  0xd7   :  { %1555 = vmatpush2.bf16.msra.mxu1 %v2536_v20  ;;  %1517 = vmatprep.subr.bf16.mxu0 %v2547_v25 }
  0xd8   :  { %1556 = vmatprep.subr.bf16.mxu1 %v2544_v24 }
  0xda   :  { %1518 = vmatpush2.bf16.msra.mxu0 %v2545_v28 }
  0xdb   :  { %1557 = vmatpush2.bf16.msra.mxu1 %v2542_v27  ;;  %1587 = vmatprep.subr.bf16.mxu0 %v2553_v30 }
  0xdc   :  { %1558 = vmatprep.subr.bf16.mxu1 %v2550_v29 }
  0xdd   :  { %1520 = vmatmul.mubr.bf16.vlgmr.msra.gmra.mxu0 %v2708_v13  ;;  %v2562_v13 = vld [vmem:[#allocation4 + $0x28] sm:$0xff]  }
  0xde   :  { %1588 = vmatpush1.bf16.msra.mxu0 %v2551_v32  ;;  %1605 = vmatprep.mubr.bf16.mxu0 %v2639_v21  ;;  %v2575_v21 = vld [vmem:[#allocation4 + $0xf0] sm:$0xff]  }
  0xdf   :  { %1559 = vmatpush2.bf16.msra.mxu1 %v2548_v31  ;;  %2212 = vmatprep.subr.bf16.mxu0 %v2557_v34 }
  0xe0   :  { %1560 = vmatprep.subr.bf16.mxu1 %v2556_v33 }
  0xe3   :  { %1561 = vmatpush2.bf16.msra.mxu1 %v2554_v35 }
  0xe4   :  { %2234 = vmatprep.subr.bf16.mxu1 %v2573_v41 }
  0xe5   :  { %2178 = vmatmul.mubr.msk.bf16.vlgmr.msra.gmra.mxu0 %vm1268_vm0, %v2719_v23  ;;  %v2577_v23 = vld [vmem:[#allocation4 + $0xe8] sm:$0xff]  }
  0xe6   :  { %1563 = vmatmul.mubr.bf16.vlgmr.msra.gmra.mxu1 %v2739_v26  ;;  %2213 = vmatpush3.bf16.msra.mxu0 %v2558_v36  ;;  %v2576_v26 = vld [vmem:[#allocation4 + $0xb0] sm:$0xff]  }
  0xe7   :  { %2214 = vmatprep.subr.bf16.mxu0 %v2559_v37  ;;  %2235 = vmatpush3.bf16.msra.mxu1 %v2574_v42 }
  0xe8   :  { %2236 = vmatprep.subr.bf16.mxu1 %v2575_v21 }
  0xea   :  { %2215 = vmatpush3.bf16.msra.mxu0 %v2560_v38 }
  0xeb   :  { %2216 = vmatprep.subr.bf16.mxu0 %v2561_v39  ;;  %2237 = vmatpush3.bf16.msra.mxu1 %v2576_v26 }
  0xec   :  { %2238 = vmatprep.subr.bf16.mxu1 %v2577_v23 }
  0xee   :  { %2217 = vmatpush3.bf16.msra.mxu0 %v2562_v13 }
  0xef   :  { %2218 = vmatprep.subr.bf16.mxu0 %v2563_v40  ;;  %2239 = vmatpush3.bf16.msra.mxu1 %v2578_v51 }
  0xf0   :  { %2240 = vmatprep.subr.bf16.mxu1 %v2579_v52 }
  0xf2   :  { %2219 = vmatpush3.bf16.msra.mxu0 %v2564_v43 }
  0xf3   :  { %2220 = vmatprep.subr.bf16.mxu0 %v2565_v45  ;;  %2241 = vmatpush3.bf16.msra.mxu1 %v2580_v53 }
  0xf4   :  { %2242 = vmatprep.subr.bf16.mxu1 %v2581_v44 }
  0xf6   :  { %2221 = vmatpush3.bf16.msra.mxu0 %v2566_v54 }
  0xf7   :  { %2222 = vmatprep.subr.bf16.mxu0 %v2567_v46  ;;  %2243 = vmatpush3.bf16.msra.mxu1 %v2582_v55  ;;  %v282_v46 = vsub.s32 3, %v269_v1 }
  0xf8   :  { %2244 = vmatprep.subr.bf16.mxu1 %v2583_v56 }
  0xfa   :  { %2223 = vmatpush3.bf16.msra.mxu0 %v2568_v47  ;;  %v278_v47 = vsub.s32 2, %v269_v1 }
  0xfb   :  { %2224 = vmatprep.subr.bf16.mxu0 %v2569_v48  ;;  %2245 = vmatpush3.bf16.msra.mxu1 %v2584_v57 }
  0xfc   :  { %2246 = vmatprep.subr.bf16.mxu1 %v2585_v58  ;;  %v279_v51 = vrot.slane %v266_v7, %v278_v47 }
  0xfe   :  { %2225 = vmatpush3.bf16.msra.mxu0 %v2570_v49 }
  0xff   :  { %2226 = vmatprep.subr.bf16.mxu0 %v2571_v12  ;;  %2247 = vmatpush3.bf16.msra.mxu1 %v2586_v59 }
 0x100   :  { %2248 = vmatprep.subr.bf16.mxu1 %v2587_v60 }
 0x102   :  { %2227 = vmatpush3.bf16.msra.mxu0 %v2572_v50  ;;  %v283_v50 = vrot.slane %v266_v7, %v282_v46 }
 0x103   :  { %2249 = vmatpush3.bf16.msra.mxu1 %v2588_v61 }
 0x11d   :  { %v1306_v2 = vpop.f32.mrf.mxu0 }
 0x11e   :  { %v1349_v62 = vpop.f32.mrf.mxu1  ;;  %v1307_v16 = vadd.f32 %v1306_v2, %v271_v10 }
 0x11f   :  { %v1308_v6 = vpop.f32.mrf.mxu0 }
 0x120   :  { %v1351_v0 = vpop.f32.mrf.mxu1  ;;  %v1309_v15 = vadd.f32 %v1308_v6, %v275_v9  ;;  %v1350_v25 = vadd.f32 %v1349_v62, %v1307_v16 }
 0x121   :  { %v1310_v11 = vpop.f32.mrf.mxu0 }
 0x122   :  { %v1353_v3 = vpop.f32.mrf.mxu1  ;;  %v1311_v18 = vadd.f32 %v1310_v11, %v271_v10  ;;  %v1352_v22 = vadd.f32 %v1351_v0, %v1309_v15 }
 0x123   :  { %v1312_v17 = vpop.f32.mrf.mxu0 }
 0x124   :  { %v1355_v8 = vpop.f32.mrf.mxu1  ;;  %v1313_v24 = vadd.f32 %v1312_v17, %v275_v9  ;;  %v1354_v28 = vadd.f32 %v1353_v3, %v1311_v18 }
 0x126   :  { %v1435_v14 = vpop.f32.mrf.mxu1  ;;  %v1356_v33 = vadd.f32 %v1355_v8, %v1313_v24 }
 0x128   :  { %v1437_v19 = vpop.f32.mrf.mxu1 }
 0x12a   :  { %v1439_v30 = vpop.f32.mrf.mxu1 }
 0x12c   :  { %v1441_v39 = vpop.f32.mrf.mxu1 }
 0x15d   :  { %v1392_v20 = vpop.f32.mrf.mxu0 }
 0x15e   :  { %v1393_v31 = vadd.f32 %v1392_v20, %v1350_v25 }
 0x15f   :  { %v1394_v27 = vpop.f32.mrf.mxu0 }
 0x160   :  { %v1395_v29 = vadd.f32 %v1394_v27, %v1352_v22  ;;  %v1436_v13 = vadd.f32 %v1435_v14, %v1393_v31 }
 0x161   :  { %v1396_v32 = vpop.f32.mrf.mxu0 }
 0x162   :  { %v1397_v34 = vadd.f32 %v1396_v32, %v1354_v28  ;;  %v1438_v36 = vadd.f32 %v1437_v19, %v1395_v29  ;;  %v1616_v43 = vmax.f32 %v1436_v13, 0.0 }
 0x163   :  { %v1398_v35 = vpop.f32.mrf.mxu0 }
 0x164   :  { %v1440_v37 = vadd.f32 %v1439_v30, %v1397_v34  ;;  %v1399_v38 = vadd.f32 %v1398_v35, %v1356_v33  ;;  %v1617_v42 = vmax.f32 %v1438_v36, 0.0  ;;  %v2179_v30 = vld [vmem:[%s2766_s4] ss:$0 sm:$0xff] }
 0x166   :  { %v1442_v40 = vadd.f32 %v1441_v39, %v1399_v38  ;;  %v1620_v41 = vmax.f32 %v1440_v37, 0.0  ;;  %v1478_v23 = vpop.f32.mrf.mxu1 }
 0x167   :  { %v1479_v56 = vadd.f32 %v1478_v23, %v279_v51 }
 0x168   :  { %v1621_v21 = vmax.f32 %v1442_v40, 0.0  ;;  %v1624_v26 = vpack.c.bf16 %v1620_v41, %v1616_v43  ;;  %v1480_v54 = vpop.f32.mrf.mxu1 }
 0x169   :  { %v1481_v55 = vadd.f32 %v1480_v54, %v283_v50 }
 0x16a   :  { %v1625_v45 = vpack.c.bf16 %v1621_v21, %v1617_v42  ;;  %v1482_v49 = vpop.f32.mrf.mxu1 }
 0x16b   :  { %v1483_v59 = vadd.f32 %v1482_v49, %v279_v51 }
 0x16c   :  { %1923 = vmatprep.mubr.bf16.mxu0 %v1625_v45  ;;  %v1484_v53 = vpop.f32.mrf.mxu1 }
 0x16d   :  { %1924 = vmatmul.mubr.bf16.vlgmr.msra.gmra.mxu0 %v1624_v26  ;;  %v1485_v0 = vadd.f32 %v1484_v53, %v283_v50 }
 0x19d   :  { %v1521_v48 = vpop.f32.mrf.mxu0 }
 0x19e   :  { %v1522_v61 = vadd.f32 %v1521_v48, %v1479_v56 }
 0x19f   :  { %v1523_v12 = vpop.f32.mrf.mxu0 }
 0x1a0   :  { %v1524_v60 = vadd.f32 %v1523_v12, %v1481_v55 }
 0x1a1   :  { %v1525_v52 = vpop.f32.mrf.mxu0 }
 0x1a2   :  { %v1526_v2 = vadd.f32 %v1525_v52, %v1483_v59 }
 0x1a3   :  { %v1527_v44 = vpop.f32.mrf.mxu0 }
 0x1a4   :  { %v1528_v6 = vadd.f32 %v1527_v44, %v1485_v0 }
 0x1a5   :  { %v1607_v58 = vpop.f32.mrf.mxu0 }
 0x1a6   :  { %v1564_v57 = vpop.f32.mrf.mxu1 }
 0x1a7   :  { %v1609_v63 = vpop.f32.mrf.mxu0  ;;  %v1565_v3 = vadd.f32 %v1564_v57, %v1522_v61 }
 0x1a8   :  { %v1566_v62 = vpop.f32.mrf.mxu1 }
 0x1a9   :  { %v1567_v1 = vadd.f32 %v1566_v62, %v1524_v60  ;;  %v1611_v5 = vpop.f32.mrf.mxu0  ;;  %v1608_v15 = vadd.f32 %v1607_v58, %v1565_v3 }
 0x1aa   :  { %v1568_v4 = vpop.f32.mrf.mxu1 }
 0x1ab   :  { %v1569_v7 = vadd.f32 %v1568_v4, %v1526_v2  ;;  %v1613_v9 = vpop.f32.mrf.mxu0  ;;  %v1610_v10 = vadd.f32 %v1609_v63, %v1567_v1  ;;  %v1618_v20 = vmax.f32 %v1608_v15, 0.0 }
 0x1ac   :  { %v1570_v8 = vpop.f32.mrf.mxu1 }
 0x1ad   :  { %v1612_v11 = vadd.f32 %v1611_v5, %v1569_v7  ;;  %v1571_v14 = vadd.f32 %v1570_v8, %v1528_v6  ;;  %v1619_v18 = vmax.f32 %v1610_v10, 0.0 }
 0x1af   :  { %v1614_v16 = vadd.f32 %v1613_v9, %v1571_v14  ;;  %v1622_v17 = vmax.f32 %v1612_v11, 0.0 }
 0x1b1   :  { %v1623_v19 = vmax.f32 %v1614_v16, 0.0  ;;  %v1626_v24 = vpack.c.bf16 %v1622_v17, %v1618_v20 }
 0x1b3   :  { %v1627_v22 = vpack.c.bf16 %v1623_v19, %v1619_v18 }
 0x1b5   :  { %1964 = vmatprep.mubr.bf16.mxu1 %v1627_v22 }
 0x1b6   :  { %1965 = vmatmul.mubr.bf16.vlgmr.msra.gmra.mxu1 %v1626_v24 }
 0x22d   :  { %v2228_v25 = vpop.f32.mrf.mxu0 }
 0x22f   :  { %v2229_v27 = vpop.f32.mrf.mxu0 }
 0x230   :  { %v2230_v29 = vadd.f32 %v2229_v27, %v2228_v25 }
 0x231   :  { %v2231_v28 = vpop.f32.mrf.mxu0 }
 0x232   :  { %v1926_v34 = vadd.f32 %v2230_v29, %v2179_v30 }
 0x233   :  { %v2232_v31 = vpop.f32.mrf.mxu0 }
 0x234   :  { %v2233_v35 = vadd.f32 %v2232_v31, %v2231_v28 }
 0x236   :  { %v1929_v13 = vadd.f32 %v2233_v35, %v2179_v30 }
 0x276   :  { %v2250_v32 = vpop.f32.mrf.mxu1 }
 0x278   :  { %v2251_v33 = vpop.f32.mrf.mxu1 }
 0x279   :  { %v2252_v36 = vadd.f32 %v2251_v33, %v2250_v32 }
 0x27a   :  { %v2253_v37 = vpop.f32.mrf.mxu1 }
 0x27b   :  { %v1967_v38 = vadd.f32 %v2252_v36, %v1926_v34 }
 0x27c   :  { %v2254_v39 = vpop.f32.mrf.mxu1 }
 0x27d   :  { %1973 = vst [vmem:[%s2767_s5] sm:$0xff] %v1967_v38  ;;  %v2255_v40 = vadd.f32 %v2254_v39, %v2253_v37 }
 0x27f   :  { %v1970_v41 = vadd.f32 %v2255_v40, %v1929_v13 }
 0x281   :  { %1974 = vst [vmem:[%s2767_s5 + $0x8] sm:$0xff] %v1970_v41 }
 0x282   :  { %1979 = vsyncpa [#allocation3], 1 }
 0x283   :  { %1980 = vsyncpa [#allocation5], 1 }

</bundles_post_ra>
